<compile_context>
chip_gen: v7x
topology: tpu7x:2x2x1
jax: 0.10.0
libtpu: 0.0.40
codegen_flags: <defaults>
</compile_context>

<pallas_src>
import functools
import math

import jax
import jax.numpy as jnp
from jax.experimental import pallas as pl
from jax.experimental.pallas import tpu as pltpu


# ----------------------------- tempered math (in-kernel) -----------------------------
def _int_exponent(e):
    """Return e as a small static int if it rounds to one, else None."""
    k = int(round(e))
    if abs(e - k) < 1e-9 and abs(k) <= 8:
        return k
    return None


def _chain_ok(e, t2):
    """True if x**e can be computed as a multiply chain (negative exponents are only
    safe when t2 > 1, where the base is guaranteed >= 1)."""
    k = _int_exponent(e)
    return (k is not None) and (k >= 0 or t2 > 1.0)


def _pow_chain(x, k):
    """x**k for a small static integer k via exponentiation-by-squaring.
    Negative k uses an approximate reciprocal + one Newton-Raphson step (only ever
    called when x >= 1, i.e. on the t2 > 1 paths), keeping error ~1e-7 relative."""
    if k == 0:
        return jnp.ones_like(x)
    if k < 0:
        r = pl.reciprocal(x, approx=True)
        x = r * (2.0 - x * r)          # one NR refinement step (VPU filler)
        k = -k
    result = None
    acc = x
    while k:
        if k & 1:
            result = acc if result is None else result * acc
        k >>= 1
        if k:
            acc = acc * acc
    return result


def _log_t(u, t):
    """log_t(u); `t` is a static Python float."""
    if t == 1.0:
        return jnp.log(u)
    return (jnp.power(u, 1.0 - t) - 1.0) / (1.0 - t)


def _exp_t(u, t):
    """exp_t(u).  Small-integer 1/(1-t) exponents become multiply chains."""
    if t == 1.0:
        return jnp.exp(u)
    inv = 1.0 / (1.0 - t)
    base = jnp.maximum(1.0 + (1.0 - t) * u, 0.0)
    if _chain_ok(inv, t):
        return _pow_chain(base, _int_exponent(inv))
    return jnp.power(base, inv)


def _tempered_norm(na0, mu, t2, num_iters, axis):
    """Normalization constant of the tempered softmax (t2 != 1)."""
    if t2 > 1.0:
        # fixed-point iteration (compute_normalization_fixed_point)
        na = na0
        for _ in range(num_iters):
            logz = jnp.sum(_exp_t(na, t2), axis=axis, keepdims=True)
            na = na0 * jnp.power(logz, 1.0 - t2)
        logz = jnp.sum(_exp_t(na, t2), axis=axis, keepdims=True)
        return -_log_t(1.0 / logz, t2) + mu
    # binary search (compute_normalization_binary_search), t2 < 1
    eff_dim = jnp.sum((na0 > -1.0 / (1.0 - t2)).astype(jnp.float32),
                      axis=axis, keepdims=True)
    lower = jnp.zeros_like(mu)
    upper = -_log_t(1.0 / eff_dim, t2) * jnp.ones_like(lower)
    for _ in range(num_iters):
        logt_p = (upper + lower) * 0.5
        sp = jnp.sum(_exp_t(na0 - logt_p, t2), axis=axis, keepdims=True)
        below = sp < 1.0
        lower = jnp.where(below, lower, logt_p)
        upper = jnp.where(below, logt_p, upper)
    return (upper + lower) * 0.5 + mu


# ------------------------------------ kernel -----------------------------------------
def _bi_tempered_kernel(act_ref, lab_ref, out_ref, *, t1, t2, num_iters,
                        num_classes, class_axis, on_value, off_value,
                        label_const):
    act = act_ref[...].astype(jnp.float32)   # (C, TN) if class_axis==0 else (TM, C)
    lab = lab_ref[...]                       # int32, (1, TN) or (TM, 1)
    ax = class_axis
    smoothing = (off_value != 0.0)

    cls = jax.lax.broadcasted_iota(jnp.int32, act.shape, ax)
    onehot = (cls == lab)                    # implicit (smoothed) one-hot mask

    mu = jnp.max(act, axis=ax, keepdims=True)
    na0 = act - mu

    if t2 == 1.0:
        # Plain softmax normalization: only row-vector log/reciprocal + the
        # unavoidable full-tile exps.
        e = jnp.exp(na0)
        z = jnp.sum(e, axis=ax, keepdims=True)
        rz = pl.reciprocal(z, approx=True)
        rz = rz * (2.0 - z * rz)                         # NR refine (row-level)
        e_y = jnp.sum(jnp.where(onehot, e, 0.0), axis=ax, keepdims=True)
        p_y = e_y * rz                                   # true-class probability
        if t1 == 1.0:
            sum_pow2 = z * rz                            # == sum_c probs
            if smoothing:
                logz = jnp.log(z)                        # row-vector log only
                sum_logt_p = (jnp.sum(na0, axis=ax, keepdims=True)
                              - float(num_classes) * logz)
        else:
            logz = jnp.log(z)                            # row-vector log only
            lp = na0 - logz                              # log(probs), no full-tile log
            sum_pow2 = jnp.sum(jnp.exp((2.0 - t1) * lp), axis=ax, keepdims=True)
            if smoothing:
                sum_pow1 = jnp.sum(jnp.exp((1.0 - t1) * lp), axis=ax, keepdims=True)
                sum_logt_p = (sum_pow1 - float(num_classes)) * (1.0 / (1.0 - t1))
    else:
        norm = _tempered_norm(na0, mu, t2, num_iters, ax)
        inv2 = 1.0 / (1.0 - t2)
        # probs = base ** inv2; every epilogue quantity is a power of `base`.
        base = jnp.maximum(1.0 + (1.0 - t2) * (act - norm), 0.0)

        e_pow2 = (2.0 - t1) * inv2           # probs**(2-t1) == base**e_pow2
        e_pow1 = (1.0 - t1) * inv2           # probs**(1-t1) == base**e_pow1
        need_lb = ((not _chain_ok(e_pow2, t2))
                   or (smoothing and t1 == 1.0)
                   or (smoothing and t1 != 1.0 and not _chain_ok(e_pow1, t2)))
        lb = jnp.log(base) if need_lb else None          # one shared full-tile log

        def bpow(e):
            if _chain_ok(e, t2):
                return _pow_chain(base, _int_exponent(e))
            return jnp.exp(e * lb)

        sum_pow2 = jnp.sum(bpow(e_pow2), axis=ax, keepdims=True)

        # Gather base at the true class first, then power the (cheap) row vector.
        b_y = jnp.sum(jnp.where(onehot, base, 0.0), axis=ax, keepdims=True)
        if _chain_ok(inv2, t2):
            p_y = _pow_chain(b_y, _int_exponent(inv2))
        else:
            p_y = jnp.power(b_y, inv2)

        if smoothing:
            if t1 == 1.0:
                sum_logt_p = inv2 * jnp.sum(lb, axis=ax, keepdims=True)
            else:
                sum_pow1 = jnp.sum(bpow(e_pow1), axis=ax, keepdims=True)
                sum_logt_p = (sum_pow1 - float(num_classes)) * (1.0 / (1.0 - t1))

    logt_py = _log_t(p_y, t1)                            # row-vector only
    if smoothing:
        cross = off_value * sum_logt_p + (on_value - off_value) * logt_py
    else:
        cross = on_value * logt_py

    loss = label_const - cross + sum_pow2 * (1.0 / (2.0 - t1))
    out_ref[...] = loss.astype(out_ref.dtype)


# ------------------------------------ wrapper -----------------------------------------
def _round_up(x, m):
    return ((x + m - 1) // m) * m


def _vmem_capacity_bytes():
    try:
        info = pltpu.get_tpu_info()
        cap = getattr(info, "vmem_capacity_bytes", None)
        if cap:
            return int(cap)
    except Exception:
        pass
    return 64 * 1024 * 1024   # conservative fallback: v7x per-TensorCore VMEM


def bi_tempered_logistic_loss(activations, labels, *, t1, t2,
                              label_smoothing=0.0, num_iters=5,
                              reduction="mean"):
    """activations: (N, C) float; labels: (N,) int or (N, C) one-hot float."""
    n, c = activations.shape
    t1, t2 = float(t1), float(t2)

    # Integer class labels (one-hot label inputs are one-hot per the module spec).
    if labels.ndim == activations.ndim:
        labels_int = jnp.argmax(labels, axis=-1).astype(jnp.int32)
    else:
        labels_int = labels.astype(jnp.int32)

    # Smoothed one-hot is two-valued: on_value at the true class, off_value elsewhere.
    if label_smoothing > 0.0:
        off = float(label_smoothing) / (c - 1)
        on = 1.0 - float(label_smoothing) * c / (c - 1) + off
    else:
        off, on = 0.0, 1.0

    # Label-only loss terms collapse to a per-row constant (host math).
    def _log_t_s(u, t):
        return math.log(u) if t == 1.0 else (u ** (1.0 - t) - 1.0) / (1.0 - t)

    label_const = (on * _log_t_s(on + 1e-10, t1) - on ** (2.0 - t1) / (2.0 - t1)
                   + (c - 1) * (off * _log_t_s(off + 1e-10, t1)
                                - off ** (2.0 - t1) / (2.0 - t1)))

    # -------- VMEM budgeting (per-generation) --------
    # Live set ~ 2 double-buffered activation tiles + ~8 full-tile f32 temporaries
    # (act_f32, na0/na, base, lb, pow2, iota, masks, ...).  The kernel is EUP-bound,
    # so ~2 MiB tiles already hide the ~0.35us/step pipeline overhead.
    vmem_cap = _vmem_capacity_bytes()                  # 64 MiB/TC on v7x, 128 on v5e/v6e
    vmem_limit = int(min(max(32 * 2**20, vmem_cap - 16 * 2**20), 48 * 2**20))
    tile_budget = int(max(256 * 1024, min(2 * 2**20, (vmem_limit - 8 * 2**20) // 10)))
    elem_bytes = 4                                     # temps are f32

    # -------- layout / tiling --------
    # Only genuinely small class counts benefit from batch-on-lanes packing; for
    # C >= 128 the natural (N, C) layout already fills every lane and we avoid an
    # extra host-side transpose (a full HBM read+write of the activations).
    classes_on_sublanes = c < 128

    if classes_on_sublanes:
        max_bn = max(128, min(8192, (tile_budget // (elem_bytes * c)) // 128 * 128))
        two_step = _round_up(-(-n // 2), 128)          # target >= 2 grid steps (v7x)
        block_n = max(128, min(max_bn, two_step))
        n_pad = _round_up(n, block_n)
        if n_pad != n:
            activations = jnp.pad(activations, ((0, n_pad - n), (0, 0)))
            labels_int = jnp.pad(labels_int, (0, n_pad - n))
        # TODO(synk): fold this small-C transpose into the kernel (XLU) once a
        # (block_n, C<128) in-kernel transpose is verified to lower; the extra HBM
        # pass here is over a C<128-wide array, so it is a minor cost.
        act_in = jnp.transpose(activations)            # (C, N_pad)
        lab_in = labels_int.reshape(1, n_pad)
        grid = (n_pad // block_n,)
        in_specs = [pl.BlockSpec((c, block_n), lambda i: (0, i)),
                    pl.BlockSpec((1, block_n), lambda i: (0, i))]
        out_specs = pl.BlockSpec((1, block_n), lambda i: (0, i))
        out_shape = jax.ShapeDtypeStruct((1, n_pad), jnp.float32)
        class_axis = 0
    else:
        # TODO(synk): for extreme C (where even block_m=8 temporaries overflow VMEM)
        # chunk the class axis inside the kernel; not needed for practical C here.
        max_bm = max(8, min(1024, (tile_budget // (elem_bytes * c)) // 8 * 8))
        two_step = _round_up(-(-n // 2), 8)            # target >= 2 grid steps (v7x)
        block_m = max(8, min(max_bm, two_step))
        n_pad = _round_up(n, block_m)
        if n_pad != n:
            activations = jnp.pad(activations, ((0, n_pad - n), (0, 0)))
            labels_int = jnp.pad(labels_int, (0, n_pad - n))
        act_in = activations                            # natural (N_pad, C) layout
        lab_in = labels_int.reshape(n_pad, 1)
        grid = (n_pad // block_m,)
        in_specs = [pl.BlockSpec((block_m, c), lambda i: (i, 0)),
                    pl.BlockSpec((block_m, 1), lambda i: (i, 0))]
        out_specs = pl.BlockSpec((block_m, 1), lambda i: (i, 0))
        out_shape = jax.ShapeDtypeStruct((n_pad, 1), jnp.float32)
        class_axis = 1

    kernel = functools.partial(
        _bi_tempered_kernel, t1=t1, t2=t2, num_iters=int(num_iters),
        num_classes=c, class_axis=class_axis, on_value=on, off_value=off,
        label_const=float(label_const))

    transc_per_elem = (2 * (int(num_iters) + 1) + 3) if t2 != 1.0 else 3
    cost = pl.CostEstimate(
        flops=int(8 * (int(num_iters) + 2) * n_pad * c),
        transcendentals=int(transc_per_elem * n_pad * c),
        bytes_accessed=int(act_in.size * act_in.dtype.itemsize + 8 * n_pad))

    per_row = pl.pallas_call(
        kernel,
        out_shape=out_shape,
        grid_spec=pltpu.PrefetchScalarGridSpec(
            num_scalar_prefetch=0,
            grid=grid,
            in_specs=in_specs,
            out_specs=out_specs),
        compiler_params=pltpu.CompilerParams(
            dimension_semantics=("parallel",),
            vmem_limit_bytes=vmem_limit),
        cost_estimate=cost,
    )(act_in, lab_in)

    loss_values = per_row[0, :n] if class_axis == 0 else per_row[:n, 0]

    if reduction == "none":
        return loss_values
    if reduction == "sum":
        return jnp.sum(loss_values)
    return jnp.mean(loss_values)


# ------------------------- pure-JAX reference (mirrors the PyTorch module) ------------
def _log_t_ref(u, t):
    if t == 1.0:
        return jnp.log(u)
    return (jnp.power(u, 1.0 - t) - 1.0) / (1.0 - t)


def _exp_t_ref(u, t):
    if t == 1.0:
        return jnp.exp(u)
    return jnp.power(jnp.maximum(1.0 + (1.0 - t) * u, 0.0), 1.0 / (1.0 - t))


def _reference(activations, labels, *, t1, t2, label_smoothing=0.0,
               num_iters=5, reduction="mean"):
    act = activations.astype(jnp.float32)
    _, c = act.shape
    if labels.ndim < act.ndim:
        lab = jax.nn.one_hot(labels, c, dtype=jnp.float32)
    else:
        lab = labels.astype(jnp.float32)
    if label_smoothing > 0:
        lab = ((1.0 - label_smoothing * c / (c - 1)) * lab
               + label_smoothing / (c - 1))
    if t2 == 1.0:
        probs = jax.nn.softmax(act, axis=-1)
    else:
        mu = jnp.max(act, axis=-1, keepdims=True)
        na0 = act - mu
        if t2 > 1.0:
            na = na0
            for _ in range(num_iters):
                logz = jnp.sum(_exp_t_ref(na, t2), axis=-1, keepdims=True)
                na = na0 * jnp.power(logz, 1.0 - t2)
            logz = jnp.sum(_exp_t_ref(na, t2), axis=-1, keepdims=True)
            norm = -_log_t_ref(1.0 / logz, t2) + mu
        else:
            eff = jnp.sum((na0 > -1.0 / (1.0 - t2)).astype(jnp.float32),
                          axis=-1, keepdims=True)
            lower = jnp.zeros_like(mu)
            upper = -_log_t_ref(1.0 / eff, t2) * jnp.ones_like(lower)
            for _ in range(num_iters):
                mid = (upper + lower) / 2.0
                sp = jnp.sum(_exp_t_ref(na0 - mid, t2), axis=-1, keepdims=True)
                upd = (sp < 1.0).astype(jnp.float32)
                lower = lower * upd + (1.0 - upd) * mid
                upper = upper * (1.0 - upd) + upd * mid
            norm = (upper + lower) / 2.0 + mu
        probs = _exp_t_ref(act - norm, t2)
    loss = (lab * _log_t_ref(lab + 1e-10, t1)
            - lab * _log_t_ref(probs, t1)
            - jnp.power(lab, 2.0 - t1) / (2.0 - t1)
            + jnp.power(probs, 2.0 - t1) / (2.0 - t1)).sum(-1)
    if reduction == "none":
        return loss
    if reduction == "sum":
        return loss.sum()
    return loss.mean()


if __name__ == "__main__":
    key = jax.random.PRNGKey(0)
    ks = jax.random.split(key, 10)

    # case 1: t2 > 1 (fixed point), integer labels, 'mean', tiny C -> lane-dense layout
    N1, C1, t1a, t2a = 16, 8, 0.8, 1.2
    act1 = jax.random.normal(ks[0], (N1, C1), dtype=jnp.float32) * 2.0
    lab1 = jax.random.randint(ks[1], (N1,), 0, C1, dtype=jnp.int32)
    out1 = jax.block_until_ready(
        bi_tempered_logistic_loss(act1, lab1, t1=t1a, t2=t2a, reduction="mean"))
    ref1 = _reference(act1, lab1, t1=t1a, t2=t2a, reduction="mean")
    assert jnp.allclose(out1, ref1, rtol=5e-4, atol=1e-4), (out1, ref1)

    # case 2: t2 < 1 (binary search), one-hot labels, label smoothing, 'none'
    N2, C2, t1b, t2b = 24, 10, 0.9, 0.7
    act2 = jax.random.normal(ks[2], (N2, C2), dtype=jnp.float32) * 3.0
    lab2_oh = jax.nn.one_hot(
        jax.random.randint(ks[3], (N2,), 0, C2, dtype=jnp.int32), C2,
        dtype=jnp.float32)
    out2 = jax.block_until_ready(
        bi_tempered_logistic_loss(act2, lab2_oh, t1=t1b, t2=t2b,
                                  label_smoothing=0.1, reduction="none"))
    ref2 = _reference(act2, lab2_oh, t1=t1b, t2=t2b, label_smoothing=0.1,
                      reduction="none")
    assert jnp.allclose(out2, ref2, rtol=5e-4, atol=1e-4), (out2, ref2)

    # case 3: C >= 128 -> natural (N, C) layout (no host transpose), 'sum',
    #         grid split into >= 2 parallel steps (v7x megacore)
    N3, C3, t1c, t2c = 20, 2048, 0.7, 1.5
    act3 = jax.random.normal(ks[4], (N3, C3), dtype=jnp.float32)
    lab3 = jax.random.randint(ks[5], (N3,), 0, C3, dtype=jnp.int32)
    out3 = jax.block_until_ready(
        bi_tempered_logistic_loss(act3, lab3, t1=t1c, t2=t2c, reduction="sum"))
    ref3 = _reference(act3, lab3, t1=t1c, t2=t2c, reduction="sum")
    assert jnp.allclose(out3, ref3, rtol=5e-4, atol=1e-3), (out3, ref3)

    # case 4: t2 == 1 (plain softmax normalization), t1 != 1, smoothing, 'mean'
    N4, C4 = 16, 8
    act4 = jax.random.normal(ks[6], (N4, C4), dtype=jnp.float32) * 1.5
    lab4 = jax.random.randint(ks[7], (N4,), 0, C4, dtype=jnp.int32)
    out4 = jax.block_until_ready(
        bi_tempered_logistic_loss(act4, lab4, t1=0.9, t2=1.0,
                                  label_smoothing=0.05, reduction="mean"))
    ref4 = _reference(act4, lab4, t1=0.9, t2=1.0, label_smoothing=0.05,
                      reduction="mean")
    assert jnp.allclose(out4, ref4, rtol=5e-4, atol=1e-4), (out4, ref4)

    # case 5: t1 == t2 == 1 with smoothing (degenerates toward smoothed CE)
    out5 = jax.block_until_ready(
        bi_tempered_logistic_loss(act4, lab4, t1=1.0, t2=1.0,
                                  label_smoothing=0.1, reduction="mean"))
    ref5 = _reference(act4, lab4, t1=1.0, t2=1.0, label_smoothing=0.1,
                      reduction="mean")
    assert jnp.allclose(out5, ref5, rtol=5e-4, atol=1e-4), (out5, ref5)

    print("KERNEL_OK")
</pallas_src>

<mosaic_0001>
module attributes {stable_mosaic.version = 11 : i64} {
  func.func @_bi_tempered_kernel(%arg0: i32, %arg1: memref<8x128xf32, #tpu.memory_space<vmem>>, %arg2: memref<1x128xi32, #tpu.memory_space<vmem>>, %arg3: memref<1x128xf32, #tpu.memory_space<vmem>>) attributes {dimension_semantics = [#tpu.dimension_semantics<parallel>], iteration_bounds = array<i64: 1>, scalar_prefetch = 0 : i64, scratch_operands = 0 : i64, tpu.core_type = #tpu.core_type<tc>, window_params = [{transform_indices = @transform_0, window_bounds = array<i64: 8, 128>}, {transform_indices = @transform_1, window_bounds = array<i64: 1, 128>}, {transform_indices = @transform_2, window_bounds = array<i64: 1, 128>}]} {
    %c0 = arith.constant 0 : index
    %c0_0 = arith.constant 0 : index
    %0 = vector.load %arg1[%c0, %c0_0] : memref<8x128xf32, #tpu.memory_space<vmem>>, vector<8x128xf32>
    %c0_1 = arith.constant 0 : index
    %c0_2 = arith.constant 0 : index
    %1 = vector.load %arg2[%c0_1, %c0_2] : memref<1x128xi32, #tpu.memory_space<vmem>>, vector<1x128xi32>
    %2 = tpu.iota {dimensions = array<i32: 0>} : vector<8x128xi32>
    %3 = vector.broadcast %1 : vector<1x128xi32> to vector<8x128xi32>
    %4 = arith.cmpi eq, %2, %3 : vector<8x128xi32>
    %cst = arith.constant dense<0xFF800000> : vector<128xf32>
    %5 = vector.multi_reduction <maximumf>, %0, %cst [0] : vector<8x128xf32> to vector<128xf32>
    %6 = vector.shape_cast %5 : vector<128xf32> to vector<1x128xf32>
    %7 = vector.broadcast %6 : vector<1x128xf32> to vector<8x128xf32>
    %8 = arith.subf %0, %7 : vector<8x128xf32>
    %cst_3 = arith.constant -2.000000e-01 : f32
    %9 = vector.broadcast %cst_3 : f32 to vector<8x128xf32>
    %10 = arith.mulf %9, %8 : vector<8x128xf32>
    %cst_4 = arith.constant 1.000000e+00 : f32
    %11 = vector.broadcast %cst_4 : f32 to vector<8x128xf32>
    %12 = arith.addf %11, %10 : vector<8x128xf32>
    %cst_5 = arith.constant 0.000000e+00 : f32
    %13 = vector.broadcast %cst_5 : f32 to vector<8x128xf32>
    %14 = arith.maximumf %12, %13 : vector<8x128xf32>
    %15 = tpu.reciprocal %14 {approx = true} : vector<8x128xf32> -> vector<8x128xf32>
    %16 = arith.mulf %14, %15 : vector<8x128xf32>
    %cst_6 = arith.constant 2.000000e+00 : f32
    %17 = vector.broadcast %cst_6 : f32 to vector<8x128xf32>
    %18 = arith.subf %17, %16 : vector<8x128xf32>
    %19 = arith.mulf %15, %18 : vector<8x128xf32>
    %20 = arith.mulf %19, %19 : vector<8x128xf32>
    %21 = arith.mulf %20, %20 : vector<8x128xf32>
    %22 = arith.mulf %19, %21 : vector<8x128xf32>
    %cst_7 = arith.constant dense<0.000000e+00> : vector<128xf32>
    %23 = vector.multi_reduction <add>, %22, %cst_7 [0] : vector<8x128xf32> to vector<128xf32>
    %24 = vector.shape_cast %23 : vector<128xf32> to vector<1x128xf32>
    %cst_8 = arith.constant -2.000000e-01 : f32
    %25 = vector.broadcast %cst_8 : f32 to vector<1x128xf32>
    %26 = math.powf %24, %25 : vector<1x128xf32>
    %27 = vector.broadcast %26 : vector<1x128xf32> to vector<8x128xf32>
    %28 = arith.mulf %8, %27 : vector<8x128xf32>
    %cst_9 = arith.constant -2.000000e-01 : f32
    %29 = vector.broadcast %cst_9 : f32 to vector<8x128xf32>
    %30 = arith.mulf %29, %28 : vector<8x128xf32>
    %cst_10 = arith.constant 1.000000e+00 : f32
    %31 = vector.broadcast %cst_10 : f32 to vector<8x128xf32>
    %32 = arith.addf %31, %30 : vector<8x128xf32>
    %cst_11 = arith.constant 0.000000e+00 : f32
    %33 = vector.broadcast %cst_11 : f32 to vector<8x128xf32>
    %34 = arith.maximumf %32, %33 : vector<8x128xf32>
    %35 = tpu.reciprocal %34 {approx = true} : vector<8x128xf32> -> vector<8x128xf32>
    %36 = arith.mulf %34, %35 : vector<8x128xf32>
    %cst_12 = arith.constant 2.000000e+00 : f32
    %37 = vector.broadcast %cst_12 : f32 to vector<8x128xf32>
    %38 = arith.subf %37, %36 : vector<8x128xf32>
    %39 = arith.mulf %35, %38 : vector<8x128xf32>
    %40 = arith.mulf %39, %39 : vector<8x128xf32>
    %41 = arith.mulf %40, %40 : vector<8x128xf32>
    %42 = arith.mulf %39, %41 : vector<8x128xf32>
    %cst_13 = arith.constant dense<0.000000e+00> : vector<128xf32>
    %43 = vector.multi_reduction <add>, %42, %cst_13 [0] : vector<8x128xf32> to vector<128xf32>
    %44 = vector.shape_cast %43 : vector<128xf32> to vector<1x128xf32>
    %cst_14 = arith.constant -2.000000e-01 : f32
    %45 = vector.broadcast %cst_14 : f32 to vector<1x128xf32>
    %46 = math.powf %44, %45 : vector<1x128xf32>
    %47 = vector.broadcast %46 : vector<1x128xf32> to vector<8x128xf32>
    %48 = arith.mulf %8, %47 : vector<8x128xf32>
    %cst_15 = arith.constant -2.000000e-01 : f32
    %49 = vector.broadcast %cst_15 : f32 to vector<8x128xf32>
    %50 = arith.mulf %49, %48 : vector<8x128xf32>
    %cst_16 = arith.constant 1.000000e+00 : f32
    %51 = vector.broadcast %cst_16 : f32 to vector<8x128xf32>
    %52 = arith.addf %51, %50 : vector<8x128xf32>
    %cst_17 = arith.constant 0.000000e+00 : f32
    %53 = vector.broadcast %cst_17 : f32 to vector<8x128xf32>
    %54 = arith.maximumf %52, %53 : vector<8x128xf32>
    %55 = tpu.reciprocal %54 {approx = true} : vector<8x128xf32> -> vector<8x128xf32>
    %56 = arith.mulf %54, %55 : vector<8x128xf32>
    %cst_18 = arith.constant 2.000000e+00 : f32
    %57 = vector.broadcast %cst_18 : f32 to vector<8x128xf32>
    %58 = arith.subf %57, %56 : vector<8x128xf32>
    %59 = arith.mulf %55, %58 : vector<8x128xf32>
    %60 = arith.mulf %59, %59 : vector<8x128xf32>
    %61 = arith.mulf %60, %60 : vector<8x128xf32>
    %62 = arith.mulf %59, %61 : vector<8x128xf32>
    %cst_19 = arith.constant dense<0.000000e+00> : vector<128xf32>
    %63 = vector.multi_reduction <add>, %62, %cst_19 [0] : vector<8x128xf32> to vector<128xf32>
    %64 = vector.shape_cast %63 : vector<128xf32> to vector<1x128xf32>
    %cst_20 = arith.constant -2.000000e-01 : f32
    %65 = vector.broadcast %cst_20 : f32 to vector<1x128xf32>
    %66 = math.powf %64, %65 : vector<1x128xf32>
    %67 = vector.broadcast %66 : vector<1x128xf32> to vector<8x128xf32>
    %68 = arith.mulf %8, %67 : vector<8x128xf32>
    %cst_21 = arith.constant -2.000000e-01 : f32
    %69 = vector.broadcast %cst_21 : f32 to vector<8x128xf32>
    %70 = arith.mulf %69, %68 : vector<8x128xf32>
    %cst_22 = arith.constant 1.000000e+00 : f32
    %71 = vector.broadcast %cst_22 : f32 to vector<8x128xf32>
    %72 = arith.addf %71, %70 : vector<8x128xf32>
    %cst_23 = arith.constant 0.000000e+00 : f32
    %73 = vector.broadcast %cst_23 : f32 to vector<8x128xf32>
    %74 = arith.maximumf %72, %73 : vector<8x128xf32>
    %75 = tpu.reciprocal %74 {approx = true} : vector<8x128xf32> -> vector<8x128xf32>
    %76 = arith.mulf %74, %75 : vector<8x128xf32>
    %cst_24 = arith.constant 2.000000e+00 : f32
    %77 = vector.broadcast %cst_24 : f32 to vector<8x128xf32>
    %78 = arith.subf %77, %76 : vector<8x128xf32>
    %79 = arith.mulf %75, %78 : vector<8x128xf32>
    %80 = arith.mulf %79, %79 : vector<8x128xf32>
    %81 = arith.mulf %80, %80 : vector<8x128xf32>
    %82 = arith.mulf %79, %81 : vector<8x128xf32>
    %cst_25 = arith.constant dense<0.000000e+00> : vector<128xf32>
    %83 = vector.multi_reduction <add>, %82, %cst_25 [0] : vector<8x128xf32> to vector<128xf32>
    %84 = vector.shape_cast %83 : vector<128xf32> to vector<1x128xf32>
    %cst_26 = arith.constant -2.000000e-01 : f32
    %85 = vector.broadcast %cst_26 : f32 to vector<1x128xf32>
    %86 = math.powf %84, %85 : vector<1x128xf32>
    %87 = vector.broadcast %86 : vector<1x128xf32> to vector<8x128xf32>
    %88 = arith.mulf %8, %87 : vector<8x128xf32>
    %cst_27 = arith.constant -2.000000e-01 : f32
    %89 = vector.broadcast %cst_27 : f32 to vector<8x128xf32>
    %90 = arith.mulf %89, %88 : vector<8x128xf32>
    %cst_28 = arith.constant 1.000000e+00 : f32
    %91 = vector.broadcast %cst_28 : f32 to vector<8x128xf32>
    %92 = arith.addf %91, %90 : vector<8x128xf32>
    %cst_29 = arith.constant 0.000000e+00 : f32
    %93 = vector.broadcast %cst_29 : f32 to vector<8x128xf32>
    %94 = arith.maximumf %92, %93 : vector<8x128xf32>
    %95 = tpu.reciprocal %94 {approx = true} : vector<8x128xf32> -> vector<8x128xf32>
    %96 = arith.mulf %94, %95 : vector<8x128xf32>
    %cst_30 = arith.constant 2.000000e+00 : f32
    %97 = vector.broadcast %cst_30 : f32 to vector<8x128xf32>
    %98 = arith.subf %97, %96 : vector<8x128xf32>
    %99 = arith.mulf %95, %98 : vector<8x128xf32>
    %100 = arith.mulf %99, %99 : vector<8x128xf32>
    %101 = arith.mulf %100, %100 : vector<8x128xf32>
    %102 = arith.mulf %99, %101 : vector<8x128xf32>
    %cst_31 = arith.constant dense<0.000000e+00> : vector<128xf32>
    %103 = vector.multi_reduction <add>, %102, %cst_31 [0] : vector<8x128xf32> to vector<128xf32>
    %104 = vector.shape_cast %103 : vector<128xf32> to vector<1x128xf32>
    %cst_32 = arith.constant -2.000000e-01 : f32
    %105 = vector.broadcast %cst_32 : f32 to vector<1x128xf32>
    %106 = math.powf %104, %105 : vector<1x128xf32>
    %107 = vector.broadcast %106 : vector<1x128xf32> to vector<8x128xf32>
    %108 = arith.mulf %8, %107 : vector<8x128xf32>
    %cst_33 = arith.constant -2.000000e-01 : f32
    %109 = vector.broadcast %cst_33 : f32 to vector<8x128xf32>
    %110 = arith.mulf %109, %108 : vector<8x128xf32>
    %cst_34 = arith.constant 1.000000e+00 : f32
    %111 = vector.broadcast %cst_34 : f32 to vector<8x128xf32>
    %112 = arith.addf %111, %110 : vector<8x128xf32>
    %cst_35 = arith.constant 0.000000e+00 : f32
    %113 = vector.broadcast %cst_35 : f32 to vector<8x128xf32>
    %114 = arith.maximumf %112, %113 : vector<8x128xf32>
    %115 = tpu.reciprocal %114 {approx = true} : vector<8x128xf32> -> vector<8x128xf32>
    %116 = arith.mulf %114, %115 : vector<8x128xf32>
    %cst_36 = arith.constant 2.000000e+00 : f32
    %117 = vector.broadcast %cst_36 : f32 to vector<8x128xf32>
    %118 = arith.subf %117, %116 : vector<8x128xf32>
    %119 = arith.mulf %115, %118 : vector<8x128xf32>
    %120 = arith.mulf %119, %119 : vector<8x128xf32>
    %121 = arith.mulf %120, %120 : vector<8x128xf32>
    %122 = arith.mulf %119, %121 : vector<8x128xf32>
    %cst_37 = arith.constant dense<0.000000e+00> : vector<128xf32>
    %123 = vector.multi_reduction <add>, %122, %cst_37 [0] : vector<8x128xf32> to vector<128xf32>
    %124 = vector.shape_cast %123 : vector<128xf32> to vector<1x128xf32>
    %cst_38 = arith.constant 1.000000e+00 : f32
    %125 = vector.broadcast %cst_38 : f32 to vector<1x128xf32>
    %126 = arith.divf %125, %124 : vector<1x128xf32>
    %cst_39 = arith.constant -2.000000e-01 : f32
    %127 = vector.broadcast %cst_39 : f32 to vector<1x128xf32>
    %128 = math.powf %126, %127 : vector<1x128xf32>
    %cst_40 = arith.constant 1.000000e+00 : f32
    %129 = vector.broadcast %cst_40 : f32 to vector<1x128xf32>
    %130 = arith.subf %128, %129 : vector<1x128xf32>
    %cst_41 = arith.constant -2.000000e-01 : f32
    %131 = vector.broadcast %cst_41 : f32 to vector<1x128xf32>
    %132 = arith.divf %130, %131 : vector<1x128xf32>
    %cst_42 = arith.constant 0.000000e+00 : f32
    %133 = vector.broadcast %cst_42 : f32 to vector<1x128xf32>
    %134 = arith.subf %133, %132 : vector<1x128xf32>
    %135 = arith.addf %134, %6 : vector<1x128xf32>
    %136 = vector.broadcast %135 : vector<1x128xf32> to vector<8x128xf32>
    %137 = arith.subf %0, %136 : vector<8x128xf32>
    %cst_43 = arith.constant -2.000000e-01 : f32
    %138 = vector.broadcast %cst_43 : f32 to vector<8x128xf32>
    %139 = arith.mulf %138, %137 : vector<8x128xf32>
    %cst_44 = arith.constant 1.000000e+00 : f32
    %140 = vector.broadcast %cst_44 : f32 to vector<8x128xf32>
    %141 = arith.addf %140, %139 : vector<8x128xf32>
    %cst_45 = arith.constant 0.000000e+00 : f32
    %142 = vector.broadcast %cst_45 : f32 to vector<8x128xf32>
    %143 = arith.maximumf %141, %142 : vector<8x128xf32>
    %144 = tpu.reciprocal %143 {approx = true} : vector<8x128xf32> -> vector<8x128xf32>
    %145 = arith.mulf %143, %144 : vector<8x128xf32>
    %cst_46 = arith.constant 2.000000e+00 : f32
    %146 = vector.broadcast %cst_46 : f32 to vector<8x128xf32>
    %147 = arith.subf %146, %145 : vector<8x128xf32>
    %148 = arith.mulf %144, %147 : vector<8x128xf32>
    %149 = arith.mulf %148, %148 : vector<8x128xf32>
    %150 = arith.mulf %149, %149 : vector<8x128xf32>
    %151 = arith.mulf %149, %150 : vector<8x128xf32>
    %cst_47 = arith.constant dense<0.000000e+00> : vector<128xf32>
    %152 = vector.multi_reduction <add>, %151, %cst_47 [0] : vector<8x128xf32> to vector<128xf32>
    %153 = vector.shape_cast %152 : vector<128xf32> to vector<1x128xf32>
    %cst_48 = arith.constant 0.000000e+00 : f32
    %154 = vector.broadcast %cst_48 : f32 to vector<8x128xf32>
    %155 = arith.select %4, %143, %154 : vector<8x128xi1>, vector<8x128xf32>
    %cst_49 = arith.constant dense<0.000000e+00> : vector<128xf32>
    %156 = vector.multi_reduction <add>, %155, %cst_49 [0] : vector<8x128xf32> to vector<128xf32>
    %157 = vector.shape_cast %156 : vector<128xf32> to vector<1x128xf32>
    %158 = tpu.reciprocal %157 {approx = true} : vector<1x128xf32> -> vector<1x128xf32>
    %159 = arith.mulf %157, %158 : vector<1x128xf32>
    %cst_50 = arith.constant 2.000000e+00 : f32
    %160 = vector.broadcast %cst_50 : f32 to vector<1x128xf32>
    %161 = arith.subf %160, %159 : vector<1x128xf32>
    %162 = arith.mulf %158, %161 : vector<1x128xf32>
    %163 = arith.mulf %162, %162 : vector<1x128xf32>
    %164 = arith.mulf %163, %163 : vector<1x128xf32>
    %165 = arith.mulf %162, %164 : vector<1x128xf32>
    %cst_51 = arith.constant 2.000000e-01 : f32
    %166 = vector.broadcast %cst_51 : f32 to vector<1x128xf32>
    %167 = math.powf %165, %166 : vector<1x128xf32>
    %cst_52 = arith.constant 1.000000e+00 : f32
    %168 = vector.broadcast %cst_52 : f32 to vector<1x128xf32>
    %169 = arith.subf %167, %168 : vector<1x128xf32>
    %cst_53 = arith.constant 2.000000e-01 : f32
    %170 = vector.broadcast %cst_53 : f32 to vector<1x128xf32>
    %171 = arith.divf %169, %170 : vector<1x128xf32>
    %cst_54 = arith.constant 1.000000e+00 : f32
    %172 = vector.broadcast %cst_54 : f32 to vector<1x128xf32>
    %173 = arith.mulf %172, %171 : vector<1x128xf32>
    %cst_55 = arith.constant -0.833333313 : f32
    %174 = vector.broadcast %cst_55 : f32 to vector<1x128xf32>
    %175 = arith.subf %174, %173 : vector<1x128xf32>
    %cst_56 = arith.constant 0.833333313 : f32
    %176 = vector.broadcast %cst_56 : f32 to vector<1x128xf32>
    %177 = arith.mulf %153, %176 : vector<1x128xf32>
    %178 = arith.addf %175, %177 : vector<1x128xf32>
    %c0_57 = arith.constant 0 : index
    %c0_58 = arith.constant 0 : index
    %179 = vector.load %arg3[%c0_57, %c0_58] : memref<1x128xf32, #tpu.memory_space<vmem>>, vector<1x128xf32>
    tpu.vector_store %arg3[%c0_57, %c0_58], %178 {strides = array<i32>} : memref<1x128xf32, #tpu.memory_space<vmem>>, vector<1x128xf32>,
    return
  }
  func.func @transform_0(%arg0: i32) -> (i32, i32) {
    %c0_i32 = arith.constant 0 : i32
    %c0_i32_0 = arith.constant 0 : i32
    return %c0_i32, %arg0 : i32, i32
  }
  func.func @transform_1(%arg0: i32) -> (i32, i32) {
    %c0_i32 = arith.constant 0 : i32
    %c0_i32_0 = arith.constant 0 : i32
    return %c0_i32, %arg0 : i32, i32
  }
  func.func @transform_2(%arg0: i32) -> (i32, i32) {
    %c0_i32 = arith.constant 0 : i32
    %c0_i32_0 = arith.constant 0 : i32
    return %c0_i32, %arg0 : i32, i32
  }
}

</mosaic_0001>

<bundles_post_ra>
// kernel: tpu_custom_call.1
= control target key start
LH: loop header
LB: loop body
LE: loop exit
PB: predicated region body
PF: predicated region fallthrough
CT: control target
= control target key end

     0   :  { %7 = vsyncpa [#allocation3], 0  ;;  %s563_s0 = inlined_call_operand.hbm [shape: f32[8,128], index: 0, kind: input, shape index: {}]   ;;  %s564_s1 = inlined_call_operand.vmem [shape: s32[1,128], index: 1, kind: input, shape index: {}]   ;;  %s565_s2 = inlined_call_operand.hbm [shape: f32[1,128], index: 2, kind: output, shape index: {}]  }
   0x1   :  { %8 = vsyncpa [#allocation4], 0  ;;  %s501_s9 = smov [#allocation2]   ;;  %s453_s13 = scalar_lea.hbm %s563_s0, 128 }
   0x2   :  { %s15_s10 = sshll.u32 %s501_s9, 4  ;;  %p454_p0 = scmp.ne.s32.totalorder %s563_s0, %s453_s13  ;;  %s16_s10 = int_to_ptr.vmem [resolvable:$true] %s15_s10 }
   0x3   :  { %p457_p1 = scmp.lt.u32.totalorder %s453_s13, %s563_s0 }
   0x5   :  { %p459_p2 = pnand %p457_p1, %p454_p0 }
   0x7   :  { %462 = shalt.err (!%p459_p2)
}
   0x8   :  { %s463_s18 = scalar_lea.vmem %s16_s10, 128  ;;  %p468_p4 = scmp.lt.s32.totalorder %s16_s10, %s16_s10 }
   0x9   :  { %p464_p3 = scmp.ne.s32.totalorder %s16_s10, %s463_s18  ;;  %p469_p5 = scmp.lt.s32.totalorder %s463_s18, %s463_s18 }
   0xb   :  { %p470_p6 = por %p469_p5, %p468_p4 }
   0xd   :  { %p471_p7 = pnand %p470_p6, %p464_p3 }
   0xf   :  { %474 = shalt.err (!%p471_p7)
}
  0x10   :  { %18 = dma.hbm_to_vmem [thread:$0]  %s563_s0, 128, %s16_s10, [#allocation3]  }
  0x11   :  { %497 = dma.done.wait [#allocation3], 128  }
  0x12   :  { %498 = vsyncadd [#allocation3], 4294967168  ;;  %v530_v0 = vld [vmem:[#allocation2] sm:$0xff] }
  0x13   :  { %v33_v1 = vrot.slane %v530_v0, 4 }
  0x15   :  { %v34_v2 = vmax.f32 %v530_v0, %v33_v1 }
  0x17   :  { %v35_v3 = vrot.slane %v34_v2, 2 }
  0x19   :  { %v36_v4 = vmax.f32 %v34_v2, %v35_v3 }
  0x1b   :  { %v37_v5 = vrot.slane %v36_v4, 1 }
  0x1d   :  { %v534_v6 = vmax.f32 %v36_v4, %v37_v5 }
  0x1f   :  { %v538_v7 = vsub.f32 %v530_v0, %v534_v6 }
  0x21   :  { %v40_v8 = vmul.f32 -0.2, %v538_v7 }
  0x23   :  { %v41_v9 = vadd.f32 1.0, %v40_v8 }
  0x25   :  { %v42_v10 = vmax.f32 %v41_v9, 0.0 }
  0x27   :  { %407 = vrcp.f32 %v42_v10 }
  0x31   :  { %v408_v11 = vpop.eup %407 }
  0x32   :  { %v44_v12 = vmul.f32 %v408_v11, %v42_v10 }
  0x34   :  { %v45_v13 = vsub.f32 2.0, %v44_v12 }
  0x36   :  { %v46_v14 = vmul.f32 %v408_v11, %v45_v13 }
  0x38   :  { %v47_v15 = vmul.f32 %v46_v14, %v46_v14 }
  0x3a   :  { %v48_v16 = vmul.f32 %v47_v15, %v47_v15 }
  0x3c   :  { %v49_v17 = vmul.f32 %v48_v16, %v46_v14 }
  0x3e   :  { %v50_v18 = vrot.slane %v49_v17, 4 }
  0x40   :  { %v51_v19 = vadd.f32 %v50_v18, %v49_v17 }
  0x42   :  { %v52_v20 = vrot.slane %v51_v19, 2 }
  0x44   :  { %v53_v21 = vadd.f32 %v52_v20, %v51_v19 }
  0x46   :  { %v54_v22 = vrot.slane %v53_v21, 1 }
  0x48   :  { %v55_v23 = vadd.f32 %v54_v22, %v53_v21 }
  0x4a   :  { %v215_v24 = vand.u32 2147483647, %v55_v23  ;;  %vm219_vm0 = vcmp.lt.f32.partialorder %v55_v23, 0  ;;  %vm220_vm1 = vcmp.eq.f32.partialorder %v55_v23, 0  ;;  %vm234_vm3 = vcmp.ne.f32.partialorder %v55_v23, %v55_v23 }
  0x4b   :  { %vm221_vm4 = vcmp.eq.f32.partialorder %v55_v23, 1065353216 }
  0x4c   :  { %409 = vlog2.f32 %v215_v24  ;;  %vm224_vm2 = vcmp.eq.f32.partialorder %v215_v24, 2139095040 }
  0x56   :  { %v410_v25 = vpop.eup %409 }
  0x57   :  { %v217_v26 = vmul.f32 -0.2, %v410_v25 }
  0x59   :  { %411 = vpow2.f32 %v217_v26 }
  0x63   :  { %v412_v27 = vpop.eup %411 }
  0x64   :  { %v225_v28 = vsel %vm219_vm0, 2143289344, %v412_v27 }
  0x65   :  { %v226_v29 = vsel %vm220_vm1, 2139095040, %v225_v28 }
  0x66   :  { %v233_v30 = vsel %vm224_vm2, 0, %v226_v29 }
  0x67   :  { %v237_v31 = vsel %vm234_vm3, 2143289344, %v233_v30 }
  0x68   :  { %v238_v32 = vsel %vm221_vm4, 1065353216, %v237_v31 }
  0x69   :  { %v57_v33 = vmul.f32 %v238_v32, %v538_v7 }
  0x6b   :  { %v58_v34 = vmul.f32 -0.2, %v57_v33 }
  0x6d   :  { %v59_v35 = vadd.f32 1.0, %v58_v34 }
  0x6f   :  { %v60_v36 = vmax.f32 %v59_v35, 0.0 }
  0x71   :  { %413 = vrcp.f32 %v60_v36 }
  0x7b   :  { %v414_v37 = vpop.eup %413 }
  0x7c   :  { %v62_v38 = vmul.f32 %v414_v37, %v60_v36 }
  0x7e   :  { %v63_v39 = vsub.f32 2.0, %v62_v38 }
  0x80   :  { %v64_v40 = vmul.f32 %v414_v37, %v63_v39 }
  0x82   :  { %v65_v41 = vmul.f32 %v64_v40, %v64_v40 }
  0x84   :  { %v66_v42 = vmul.f32 %v65_v41, %v65_v41 }
  0x86   :  { %v67_v43 = vmul.f32 %v66_v42, %v64_v40 }
  0x88   :  { %v68_v44 = vrot.slane %v67_v43, 4 }
  0x8a   :  { %v69_v45 = vadd.f32 %v68_v44, %v67_v43 }
  0x8c   :  { %v70_v46 = vrot.slane %v69_v45, 2 }
  0x8e   :  { %v71_v47 = vadd.f32 %v70_v46, %v69_v45 }
  0x90   :  { %v72_v48 = vrot.slane %v71_v47, 1 }
  0x92   :  { %v73_v49 = vadd.f32 %v72_v48, %v71_v47 }
  0x94   :  { %v243_v50 = vand.u32 2147483647, %v73_v49  ;;  %vm247_vm5 = vcmp.lt.f32.partialorder %v73_v49, 0  ;;  %vm248_vm6 = vcmp.eq.f32.partialorder %v73_v49, 0  ;;  %vm262_vm8 = vcmp.ne.f32.partialorder %v73_v49, %v73_v49 }
  0x95   :  { %vm249_vm9 = vcmp.eq.f32.partialorder %v73_v49, 1065353216 }
  0x96   :  { %415 = vlog2.f32 %v243_v50  ;;  %vm252_vm7 = vcmp.eq.f32.partialorder %v243_v50, 2139095040 }
  0xa0   :  { %v416_v51 = vpop.eup %415 }
  0xa1   :  { %v245_v52 = vmul.f32 -0.2, %v416_v51 }
  0xa3   :  { %417 = vpow2.f32 %v245_v52 }
  0xad   :  { %v418_v53 = vpop.eup %417 }
  0xae   :  { %v253_v54 = vsel %vm247_vm5, 2143289344, %v418_v53 }
  0xaf   :  { %v254_v55 = vsel %vm248_vm6, 2139095040, %v253_v54 }
  0xb0   :  { %v261_v56 = vsel %vm252_vm7, 0, %v254_v55 }
  0xb1   :  { %v265_v57 = vsel %vm262_vm8, 2143289344, %v261_v56 }
  0xb2   :  { %v266_v58 = vsel %vm249_vm9, 1065353216, %v265_v57 }
  0xb3   :  { %v75_v59 = vmul.f32 %v266_v58, %v538_v7 }
  0xb5   :  { %v76_v60 = vmul.f32 -0.2, %v75_v59 }
  0xb7   :  { %v77_v61 = vadd.f32 1.0, %v76_v60 }
  0xb9   :  { %v78_v62 = vmax.f32 %v77_v61, 0.0 }
  0xbb   :  { %419 = vrcp.f32 %v78_v62 }
  0xc5   :  { %v420_v63 = vpop.eup %419 }
  0xc6   :  { %v80_v1 = vmul.f32 %v420_v63, %v78_v62 }
  0xc8   :  { %v81_v2 = vsub.f32 2.0, %v80_v1 }
  0xca   :  { %v82_v3 = vmul.f32 %v420_v63, %v81_v2 }
  0xcc   :  { %v83_v4 = vmul.f32 %v82_v3, %v82_v3 }
  0xce   :  { %v84_v5 = vmul.f32 %v83_v4, %v83_v4 }
  0xd0   :  { %v85_v8 = vmul.f32 %v84_v5, %v82_v3 }
  0xd2   :  { %v86_v9 = vrot.slane %v85_v8, 4 }
  0xd4   :  { %v87_v10 = vadd.f32 %v86_v9, %v85_v8 }
  0xd6   :  { %v88_v11 = vrot.slane %v87_v10, 2 }
  0xd8   :  { %v89_v12 = vadd.f32 %v88_v11, %v87_v10 }
  0xda   :  { %v90_v13 = vrot.slane %v89_v12, 1 }
  0xdc   :  { %v91_v14 = vadd.f32 %v90_v13, %v89_v12 }
  0xde   :  { %v271_v15 = vand.u32 2147483647, %v91_v14  ;;  %vm275_vm10 = vcmp.lt.f32.partialorder %v91_v14, 0  ;;  %vm276_vm11 = vcmp.eq.f32.partialorder %v91_v14, 0  ;;  %vm290_vm13 = vcmp.ne.f32.partialorder %v91_v14, %v91_v14 }
  0xdf   :  { %vm277_vm14 = vcmp.eq.f32.partialorder %v91_v14, 1065353216 }
  0xe0   :  { %421 = vlog2.f32 %v271_v15  ;;  %vm280_vm12 = vcmp.eq.f32.partialorder %v271_v15, 2139095040 }
  0xea   :  { %v422_v16 = vpop.eup %421 }
  0xeb   :  { %v273_v17 = vmul.f32 -0.2, %v422_v16 }
  0xed   :  { %423 = vpow2.f32 %v273_v17 }
  0xf7   :  { %v424_v18 = vpop.eup %423 }
  0xf8   :  { %v281_v19 = vsel %vm275_vm10, 2143289344, %v424_v18 }
  0xf9   :  { %v282_v20 = vsel %vm276_vm11, 2139095040, %v281_v19 }
  0xfa   :  { %v289_v21 = vsel %vm280_vm12, 0, %v282_v20 }
  0xfb   :  { %v293_v22 = vsel %vm290_vm13, 2143289344, %v289_v21 }
  0xfc   :  { %v294_v23 = vsel %vm277_vm14, 1065353216, %v293_v22 }
  0xfd   :  { %v93_v24 = vmul.f32 %v294_v23, %v538_v7 }
  0xff   :  { %v94_v25 = vmul.f32 -0.2, %v93_v24 }
 0x101   :  { %v95_v26 = vadd.f32 1.0, %v94_v25 }
 0x103   :  { %v96_v27 = vmax.f32 %v95_v26, 0.0 }
 0x105   :  { %425 = vrcp.f32 %v96_v27 }
 0x10f   :  { %v426_v28 = vpop.eup %425 }
 0x110   :  { %v98_v29 = vmul.f32 %v426_v28, %v96_v27 }
 0x112   :  { %v99_v30 = vsub.f32 2.0, %v98_v29 }
 0x114   :  { %v100_v31 = vmul.f32 %v426_v28, %v99_v30 }
 0x116   :  { %v101_v32 = vmul.f32 %v100_v31, %v100_v31 }
 0x118   :  { %v102_v33 = vmul.f32 %v101_v32, %v101_v32 }
 0x11a   :  { %v103_v34 = vmul.f32 %v102_v33, %v100_v31 }
 0x11c   :  { %v104_v35 = vrot.slane %v103_v34, 4 }
 0x11e   :  { %v105_v36 = vadd.f32 %v104_v35, %v103_v34 }
 0x120   :  { %v106_v37 = vrot.slane %v105_v36, 2 }
 0x122   :  { %v107_v38 = vadd.f32 %v106_v37, %v105_v36 }
 0x124   :  { %v108_v39 = vrot.slane %v107_v38, 1 }
 0x126   :  { %v109_v40 = vadd.f32 %v108_v39, %v107_v38 }
 0x128   :  { %v299_v41 = vand.u32 2147483647, %v109_v40  ;;  %vm303_vm15 = vcmp.lt.f32.partialorder %v109_v40, 0  ;;  %vm304_vm0 = vcmp.eq.f32.partialorder %v109_v40, 0  ;;  %vm318_vm2 = vcmp.ne.f32.partialorder %v109_v40, %v109_v40 }
 0x129   :  { %vm305_vm3 = vcmp.eq.f32.partialorder %v109_v40, 1065353216 }
 0x12a   :  { %427 = vlog2.f32 %v299_v41  ;;  %vm308_vm1 = vcmp.eq.f32.partialorder %v299_v41, 2139095040 }
 0x134   :  { %v428_v42 = vpop.eup %427 }
 0x135   :  { %v301_v43 = vmul.f32 -0.2, %v428_v42 }
 0x137   :  { %429 = vpow2.f32 %v301_v43 }
 0x141   :  { %v430_v44 = vpop.eup %429 }
 0x142   :  { %v309_v45 = vsel %vm303_vm15, 2143289344, %v430_v44  ;;  %v26_v44 = vlaneseq }
 0x143   :  { %v310_v46 = vsel %vm304_vm0, 2139095040, %v309_v45 }
 0x144   :  { %v317_v47 = vsel %vm308_vm1, 0, %v310_v46 }
 0x145   :  { %v321_v48 = vsel %vm318_vm2, 2143289344, %v317_v47  ;;  %v27_v47 = vshrl.u32 %v26_v44, 7 }
 0x146   :  { %v322_v49 = vsel %vm305_vm3, 1065353216, %v321_v48  ;;  %v208_v48 = vld [vmem:[%s564_s1] ss:$0 sm:$0xff]  ;;  %s502_s1 = smov [#allocation5]  }
 0x147   :  { %v111_v50 = vmul.f32 %v322_v49, %v538_v7  ;;  %vm32_vm14 = vcmp.eq.s32.totalorder %v27_v47, %v208_v48  ;;  %s199_s22 = sshll.u32 %s502_s1, 4  ;;  %s200_s22 = int_to_ptr.vmem [resolvable:$true] %s199_s22 }
 0x148   :  { %s475_s23 = scalar_lea.vmem %s200_s22, 16  ;;  %s479_s24 = scalar_lea.vmem %s200_s22, 32 }
 0x149   :  { %v112_v51 = vmul.f32 -0.2, %v111_v50  ;;  %p476_p8 = scmp.ne.s32.totalorder %s200_s22, %s475_s23  ;;  %p480_p9 = scmp.lt.s32.totalorder %s200_s22, %s200_s22 }
 0x14a   :  { %p481_p10 = scmp.lt.s32.totalorder %s479_s24, %s475_s23 }
 0x14b   :  { %v113_v52 = vadd.f32 1.0, %v112_v51 }
 0x14c   :  { %p482_p11 = por %p481_p10, %p480_p9 }
 0x14d   :  { %v114_v53 = vmax.f32 %v113_v52, 0.0 }
 0x14e   :  { %p483_p12 = pnand %p482_p11, %p476_p8 }
 0x14f   :  { %431 = vrcp.f32 %v114_v53 }
 0x159   :  { %v432_v54 = vpop.eup %431 }
 0x15a   :  { %v116_v55 = vmul.f32 %v432_v54, %v114_v53 }
 0x15c   :  { %v117_v56 = vsub.f32 2.0, %v116_v55 }
 0x15e   :  { %v118_v57 = vmul.f32 %v432_v54, %v117_v56 }
 0x160   :  { %v119_v58 = vmul.f32 %v118_v57, %v118_v57 }
 0x162   :  { %v120_v59 = vmul.f32 %v119_v58, %v119_v58 }
 0x164   :  { %v121_v60 = vmul.f32 %v120_v59, %v118_v57 }
 0x166   :  { %v122_v61 = vrot.slane %v121_v60, 4 }
 0x168   :  { %v123_v62 = vadd.f32 %v122_v61, %v121_v60 }
 0x16a   :  { %v124_v63 = vrot.slane %v123_v62, 2 }
 0x16c   :  { %v125_v1 = vadd.f32 %v124_v63, %v123_v62 }
 0x16e   :  { %v126_v2 = vrot.slane %v125_v1, 1 }
 0x170   :  { %v127_v3 = vadd.f32 %v126_v2, %v125_v1 }
 0x172   :  { %v327_v4 = vand.u32 2147483647, %v127_v3  ;;  %vm331_vm4 = vcmp.lt.f32.partialorder %v127_v3, 0  ;;  %vm332_vm5 = vcmp.eq.f32.partialorder %v127_v3, 0  ;;  %vm346_vm7 = vcmp.ne.f32.partialorder %v127_v3, %v127_v3 }
 0x173   :  { %vm333_vm8 = vcmp.eq.f32.partialorder %v127_v3, 1065353216 }
 0x174   :  { %433 = vlog2.f32 %v327_v4  ;;  %vm336_vm6 = vcmp.eq.f32.partialorder %v327_v4, 2139095040 }
 0x17e   :  { %v434_v5 = vpop.eup %433 }
 0x17f   :  { %v329_v8 = vmul.f32 -0.2, %v434_v5 }
 0x181   :  { %435 = vpow2.f32 %v329_v8 }
 0x18b   :  { %v436_v9 = vpop.eup %435 }
 0x18c   :  { %v337_v10 = vsel %vm331_vm4, 2143289344, %v436_v9 }
 0x18d   :  { %v338_v11 = vsel %vm332_vm5, 2139095040, %v337_v10 }
 0x18e   :  { %v345_v12 = vsel %vm336_vm6, 0, %v338_v11 }
 0x18f   :  { %v349_v13 = vsel %vm346_vm7, 2143289344, %v345_v12 }
 0x190   :  { %v350_v14 = vsel %vm333_vm8, 1065353216, %v349_v13 }
 0x191   :  { %v129_v15 = vmul.f32 %v350_v14, %v538_v7 }
 0x193   :  { %v130_v16 = vmul.f32 -0.2, %v129_v15 }
 0x195   :  { %v131_v17 = vadd.f32 1.0, %v130_v16 }
 0x197   :  { %v132_v18 = vmax.f32 %v131_v17, 0.0 }
 0x199   :  { %437 = vrcp.f32 %v132_v18 }
 0x1a3   :  { %v438_v19 = vpop.eup %437 }
 0x1a4   :  { %v134_v20 = vmul.f32 %v438_v19, %v132_v18 }
 0x1a6   :  { %v135_v21 = vsub.f32 2.0, %v134_v20 }
 0x1a8   :  { %v136_v22 = vmul.f32 %v438_v19, %v135_v21 }
 0x1aa   :  { %v137_v23 = vmul.f32 %v136_v22, %v136_v22 }
 0x1ac   :  { %v138_v24 = vmul.f32 %v137_v23, %v137_v23 }
 0x1ae   :  { %v139_v25 = vmul.f32 %v138_v24, %v136_v22 }
 0x1b0   :  { %v140_v26 = vrot.slane %v139_v25, 4 }
 0x1b2   :  { %v141_v27 = vadd.f32 %v140_v26, %v139_v25 }
 0x1b4   :  { %v142_v28 = vrot.slane %v141_v27, 2 }
 0x1b6   :  { %v143_v29 = vadd.f32 %v142_v28, %v141_v27 }
 0x1b8   :  { %v144_v30 = vrot.slane %v143_v29, 1 }
 0x1ba   :  { %v145_v31 = vadd.f32 %v144_v30, %v143_v29 }
 0x1bc   :  { %439 = vrcp.f32 %v145_v31 }
 0x1c6   :  { %v440_v32 = vpop.eup %439 }
 0x1c7   :  { %v355_v7 = vand.u32 2147483647, %v440_v32  ;;  %vm359_vm9 = vcmp.lt.f32.partialorder %v440_v32, 0  ;;  %vm360_vm10 = vcmp.eq.f32.partialorder %v440_v32, 0  ;;  %vm374_vm12 = vcmp.ne.f32.partialorder %v440_v32, %v440_v32 }
 0x1c8   :  { %vm361_vm13 = vcmp.eq.f32.partialorder %v440_v32, 1065353216 }
 0x1c9   :  { %441 = vlog2.f32 %v355_v7  ;;  %vm364_vm11 = vcmp.eq.f32.partialorder %v355_v7, 2139095040 }
 0x1d3   :  { %v442_v33 = vpop.eup %441 }
 0x1d4   :  { %v357_v34 = vmul.f32 -0.2, %v442_v33 }
 0x1d6   :  { %443 = vpow2.f32 %v357_v34 }
 0x1e0   :  { %v444_v35 = vpop.eup %443 }
 0x1e1   :  { %v365_v36 = vsel %vm359_vm9, 2143289344, %v444_v35 }
 0x1e2   :  { %v366_v37 = vsel %vm360_vm10, 2139095040, %v365_v36 }
 0x1e3   :  { %v373_v38 = vsel %vm364_vm11, 0, %v366_v37 }
 0x1e4   :  { %v377_v39 = vsel %vm374_vm12, 2143289344, %v373_v38 }
 0x1e5   :  { %v378_v40 = vsel %vm361_vm13, 1065353216, %v377_v39 }
 0x1e6   :  { %v209_v41 = vadd.f32 -1.0, %v378_v40 }
 0x1e8   :  { %v151_v42 = vmul.f32 -5.0, %v209_v41 }
 0x1ea   :  { %v152_v43 = vsub.f32 0.0, %v151_v42 }
 0x1ec   :  { %v153_v45 = vadd.f32 %v152_v43, %v534_v6 }
 0x1ee   :  { %v154_v46 = vsub.f32 %v530_v0, %v153_v45 }
 0x1f0   :  { %v155_v49 = vmul.f32 -0.2, %v154_v46 }
 0x1f2   :  { %v156_v50 = vadd.f32 1.0, %v155_v49 }
 0x1f4   :  { %v157_v51 = vmax.f32 %v156_v50, 0.0 }
 0x1f6   :  { %v171_v52 = vsel %vm32_vm14, %v157_v51, 0.0  ;;  %445 = vrcp.f32 %v157_v51 }
 0x1f7   :  { %v172_v53 = vrot.slane %v171_v52, 4 }
 0x1f9   :  { %v173_v54 = vadd.f32 %v172_v53, %v171_v52 }
 0x1fb   :  { %v174_v55 = vrot.slane %v173_v54, 2 }
 0x1fd   :  { %v175_v56 = vadd.f32 %v174_v55, %v173_v54 }
 0x1ff   :  { %v176_v57 = vrot.slane %v175_v56, 1 }
 0x200   :  { %v446_v6 = vpop.eup %445 }
 0x201   :  { %v177_v58 = vadd.f32 %v176_v57, %v175_v56  ;;  %v159_v0 = vmul.f32 %v446_v6, %v157_v51 }
 0x203   :  { %447 = vrcp.f32 %v177_v58  ;;  %v160_v61 = vsub.f32 2.0, %v159_v0 }
 0x205   :  { %v161_v1 = vmul.f32 %v446_v6, %v160_v61 }
 0x207   :  { %v162_v4 = vmul.f32 %v161_v1, %v161_v1 }
 0x209   :  { %v163_v9 = vmul.f32 %v162_v4, %v162_v4 }
 0x20b   :  { %v164_v10 = vmul.f32 %v163_v9, %v162_v4 }
 0x20d   :  { %v448_v59 = vpop.eup %447  ;;  %v165_v11 = vrot.slane %v164_v10, 4 }
 0x20e   :  { %v179_v60 = vmul.f32 %v448_v59, %v177_v58 }
 0x20f   :  { %v166_v13 = vadd.f32 %v165_v11, %v164_v10 }
 0x210   :  { %v180_v62 = vsub.f32 2.0, %v179_v60 }
 0x211   :  { %v167_v15 = vrot.slane %v166_v13, 2 }
 0x212   :  { %v181_v63 = vmul.f32 %v448_v59, %v180_v62 }
 0x213   :  { %v168_v16 = vadd.f32 %v167_v15, %v166_v13 }
 0x214   :  { %v182_v2 = vmul.f32 %v181_v63, %v181_v63 }
 0x215   :  { %v169_v18 = vrot.slane %v168_v16, 1 }
 0x216   :  { %v183_v3 = vmul.f32 %v182_v2, %v182_v2 }
 0x217   :  { %v170_v22 = vadd.f32 %v169_v18, %v168_v16 }
 0x218   :  { %v184_v5 = vmul.f32 %v183_v3, %v181_v63 }
 0x219   :  { %v190_v27 = vmul.f32 0.8333333, %v170_v22 }
 0x21a   :  { %v383_v8 = vand.u32 2147483647, %v184_v5  ;;  %vm387_vm15 = vcmp.lt.f32.partialorder %v184_v5, 0  ;;  %vm388_vm0 = vcmp.eq.f32.partialorder %v184_v5, 0  ;;  %vm400_vm2 = vcmp.ne.f32.partialorder %v184_v5, %v184_v5 }
 0x21b   :  { %vm389_vm3 = vcmp.eq.f32.partialorder %v184_v5, 1065353216 }
 0x21c   :  { %449 = vlog2.f32 %v383_v8  ;;  %vm392_vm1 = vcmp.eq.f32.partialorder %v383_v8, 2139095040 }
 0x226   :  { %v450_v12 = vpop.eup %449 }
 0x227   :  { %v385_v14 = vmul.f32 0.2, %v450_v12 }
 0x229   :  { %451 = vpow2.f32 %v385_v14 }
 0x233   :  { %v452_v17 = vpop.eup %451 }
 0x234   :  { %v393_v19 = vsel %vm387_vm15, 2143289344, %v452_v17 }
 0x235   :  { %v394_v20 = vsel %vm388_vm0, 0, %v393_v19 }
 0x236   :  { %v399_v21 = vsel %vm392_vm1, 2139095040, %v394_v20 }
 0x237   :  { %v403_v23 = vsel %vm400_vm2, 2143289344, %v399_v21 }
 0x238   :  { %v404_v24 = vsel %vm389_vm3, 1065353216, %v403_v23 }
 0x239   :  { %v210_v25 = vadd.f32 -1.0, %v404_v24 }
 0x23b   :  { %v188_v26 = vmul.f32 5.0, %v210_v25 }
 0x23d   :  { %v189_v28 = vsub.f32 -0.8333333, %v188_v26 }
 0x23f   :  { %v191_v29 = vadd.f32 %v190_v27, %v189_v28 }
 0x241   :  { %192 = vst [vmem:[#allocation5] sm:$0x1] %v191_v29 }
 0x242   :  { %486 = shalt.err (!%p483_p12)
}
 0x243   :  { %s487_s27 = scalar_lea.hbm %s565_s2, 16 }
 0x244   :  { %p488_p13 = scmp.ne.s32.totalorder %s565_s2, %s487_s27  ;;  %p491_p0 = scmp.lt.u32.totalorder %s487_s27, %s565_s2 }
 0x246   :  { %p493_p1 = pnand %p491_p0, %p488_p13 }
 0x248   :  { %496 = shalt.err (!%p493_p1)
}
 0x249   :  { %202 = dma.vmem_to_hbm [thread:$0]  %s200_s22, 16, %s565_s2, [#allocation4]  }
 0x24a   :  { %499 = dma.done.wait [#allocation4], 16  }
 0x24b   :  { %500 = vsyncadd [#allocation4], 4294967280 }
 0x24c   :  { %206 = vsyncpa [#allocation3], 1 }
 0x24d   :  { %207 = vsyncpa [#allocation4], 1 }

</bundles_post_ra>
